<compile_context>
chip_gen: v7x
topology: tpu7x:2x2x1
jax: 0.10.0
libtpu: 0.0.40
codegen_flags: <defaults>
</compile_context>

<pallas_src>
import jax
import jax.numpy as jnp
from jax.experimental import pallas as pl
from jax.experimental.pallas import tpu as pltpu


def _round_up(x, m):
    return ((x + m - 1) // m) * m


def _sublane_multiple(dtype):
    # f32 -> 8, bf16 -> 16, int8/fp8 -> 32 (packed sublanes).
    return max(8, 32 // jnp.dtype(dtype).itemsize)


# Tile caps (generation-agnostic; fit v5e/v6e 128 MiB and v7x 64 MiB VMEM).
_TM_CAP = 1024
_TN_CAP = 512
_TK_CAP = 1024
# Budget for the weight-stationary configuration (whole W resident in VMEM).
_WS_VMEM_BUDGET = 26 * 1024 * 1024
# Below this many output elements, Pallas launch + per-step overhead dominates.
_PALLAS_MIN_OUT_ELEMS = 1 << 18


def _choose_kn_tiles(K, N, dtype):
    """Pick (Kp, Np, tk, tn) from the weight dims; independent of M so the
    one-time parameter prep and the per-call path agree."""
    it = jnp.dtype(dtype).itemsize
    Kp = _round_up(K, 128)
    Np128 = _round_up(N, 128)

    # Weight-stationary candidate: tk=Kp, tn=Np -> W/bias block index constant
    # across the whole grid, so they are DMA'd from HBM exactly once.
    ws_bytes = (
        2 * _TM_CAP * Kp * it        # x tiles (double-buffered)
        + 2 * Kp * Np128 * it        # whole weight (double-buffer bookkeeping)
        + 2 * _TM_CAP * Np128 * it   # out tiles (double-buffered)
        + 2 * Np128 * 4              # bias (f32)
        + _TM_CAP * Np128 * 4        # f32 accumulator (worst case)
    )
    if ws_bytes <= _WS_VMEM_BUDGET:
        return Kp, Np128, Kp, Np128

    tn = min(_TN_CAP, Np128)
    # tk: largest multiple of 128 that divides Kp and is <= _TK_CAP, so the K
    # grid axis tiles Kp exactly (no garbage reads past the zero-padded K).
    q = Kp // 128
    d = 1
    for cand in range(min(q, _TK_CAP // 128), 0, -1):
        if q % cand == 0:
            d = cand
            break
    tk = 128 * d
    Np = _round_up(N, tn)
    return Kp, Np, tk, tn


def prepare_vmap_linear_params(weight, bias, *, compute_dtype=None):
    """One-time prep for Vmap(nn.Linear): transpose weight to (K, N), zero-pad
    K/N to tile multiples, pad bias.  Do this at parameter setup, not per call.

    weight: (D_out, D_in) -- PyTorch nn.Linear layout.  bias: (D_out,).
    compute_dtype: optionally cast the matmul operands (e.g. jnp.bfloat16)
    while keeping f32 accumulation and f32 bias add.
    """
    N, K = weight.shape
    w_dtype = compute_dtype if compute_dtype is not None else weight.dtype
    Kp, Np, tk, tn = _choose_kn_tiles(K, N, w_dtype)

    w_kn = jnp.asarray(weight, w_dtype).T  # (K, N): N on lanes, MXU-RHS layout
    if (Kp, Np) != (K, N):
        w_kn = jnp.pad(w_kn, ((0, Kp - K), (0, Np - N)))
    b = jnp.asarray(bias, jnp.float32).reshape(1, N)
    if Np != N:
        b = jnp.pad(b, ((0, 0), (0, Np - N)))

    return dict(w_kn=w_kn, b=b, K=K, N=N, Kp=Kp, Np=Np, tk=tk, tn=tn,
                compute_dtype=compute_dtype)


def _vmap_linear_kernel_acc(x_ref, w_ref, b_ref, o_ref, acc_ref):
    # Narrow (e.g. bf16) outputs: accumulate in an f32 VMEM scratch, add bias
    # and downcast once per output tile.
    k = pl.program_id(2)

    @pl.when(k == 0)
    def _():
        acc_ref[...] = jnp.zeros_like(acc_ref)

    acc_ref[...] += jnp.dot(x_ref[...], w_ref[...],
                            preferred_element_type=jnp.float32)

    @pl.when(k == pl.num_programs(2) - 1)
    def _():
        o_ref[...] = (acc_ref[...] + b_ref[...]).astype(o_ref.dtype)


def _vmap_linear_kernel_f32out(x_ref, w_ref, b_ref, o_ref):
    # f32 outputs: the resident output block IS the accumulator (no scratch,
    # no finalize copy).  Bias is written at k==0.
    k = pl.program_id(2)

    @pl.when(k == 0)
    def _():
        o_ref[...] = jnp.broadcast_to(b_ref[...], o_ref.shape)

    o_ref[...] += jnp.dot(x_ref[...], w_ref[...],
                          preferred_element_type=jnp.float32)


def _linear_pallas(x_flat, params, out_dtype):
    """y = x_flat @ W^T + b with W pre-transposed/padded to (Kp, Np)."""
    M, K = x_flat.shape
    Kp, Np, tk, tn = params["Kp"], params["Np"], params["tk"], params["tn"]
    N = params["N"]
    w_kn, b = params["w_kn"], params["b"]

    cdt = params["compute_dtype"]
    if cdt is not None and x_flat.dtype != cdt:
        x_flat = x_flat.astype(cdt)
    in_dtype = x_flat.dtype
    it = jnp.dtype(in_dtype).itemsize
    out_it = jnp.dtype(out_dtype).itemsize
    sub = _sublane_multiple(in_dtype)

    # Only pad x along K, and only when D_in is not a multiple of 128 (rare).
    # Ragged M is handled by Pallas' clipped reads / masked writes -> no M*K
    # HBM padding copy of the activations.
    if K != Kp:
        x_flat = jnp.pad(x_flat, ((0, 0), (0, Kp - K)))

    tm = min(_TM_CAP, _round_up(M, sub))
    gi = pl.cdiv(M, tm)
    gj = pl.cdiv(N, tn)
    # Megacore: make sure there are >= 2 independent (i, j) tiles when possible
    # so both TensorCores get work (tn stays a multiple of 128; Np remains a
    # multiple of the halved tn, so all W/bias block reads stay in bounds).
    if gi == 1 and gj == 1 and tn >= 256 and tn % 256 == 0:
        tn //= 2
        gj = pl.cdiv(N, tn)
    gk = Kp // tk
    grid = (gi, gj, gk)

    f32_out = out_dtype == jnp.float32
    kernel = _vmap_linear_kernel_f32out if f32_out else _vmap_linear_kernel_acc
    scratch = [] if f32_out else [pltpu.VMEM((tm, tn), jnp.float32)]

    # VMEM budget from the actual buffers (double-buffered inputs/outputs +
    # optional f32 accumulator), with headroom; stays well under v7x's 64 MiB.
    vmem_bytes = (2 * tm * tk * it + 2 * tk * tn * it + 2 * tn * 4
                  + 2 * tm * tn * out_it
                  + (0 if f32_out else tm * tn * 4))
    vmem_limit = int(min(60 * 1024 * 1024,
                         max(int(1.5 * vmem_bytes) + (2 << 20),
                             16 * 1024 * 1024)))

    # Honest HBM traffic: x is re-streamed grid_j times, W grid_i times.
    cost = pl.CostEstimate(
        flops=2 * M * Kp * N,
        transcendentals=0,
        bytes_accessed=int(gj * M * Kp * it + gi * Kp * Np * it
                           + Np * 4 + M * N * out_it),
    )

    out = pl.pallas_call(
        kernel,
        out_shape=jax.ShapeDtypeStruct((M, N), out_dtype),
        grid_spec=pltpu.PrefetchScalarGridSpec(
            num_scalar_prefetch=0,
            grid=grid,
            in_specs=[
                pl.BlockSpec((tm, tk), lambda i, j, k: (i, k)),   # x   (M, Kp)
                pl.BlockSpec((tk, tn), lambda i, j, k: (k, j)),   # W   (Kp, Np)
                pl.BlockSpec((1, tn), lambda i, j, k: (0, j)),    # b   (1, Np)
            ],
            out_specs=pl.BlockSpec((tm, tn), lambda i, j, k: (i, j)),
            scratch_shapes=scratch,
        ),
        compiler_params=pltpu.CompilerParams(
            # M/N tiles are independent -> shard across the 2 TensorCores;
            # K is the reduction axis (resident accumulator) -> keep it the
            # innermost, sequential axis.  Do not reorder when tuning.
            dimension_semantics=("parallel", "parallel", "arbitrary"),
            vmem_limit_bytes=vmem_limit,
        ),
        cost_estimate=cost,
    )(x_flat, w_kn, b)
    return out


def vmap_linear(x, params, *, force_pallas=False):
    """Equivalent of Vmap(nn.Linear(D_in, D_out))(x) for x of shape (B, S, D_in),
    using parameters prepared once by `prepare_vmap_linear_params`."""
    B, S, D_in = x.shape
    K, N = params["K"], params["N"]
    assert D_in == K, f"D_in mismatch: {D_in} vs {K}"
    M = B * S
    out_dtype = x.dtype

    # vmap glue: (B, S, D_in) -> (B*S, D_in)
    x_flat = x.reshape(M, D_in)

    if not force_pallas and M * N < _PALLAS_MIN_OUT_ELEMS:
        # Tiny problem: skip the custom call, let XLA fuse it.
        out_flat = (jnp.dot(x_flat, params["w_kn"][:K, :N])
                    + params["b"][0, :N]).astype(out_dtype)
    else:
        out_flat = _linear_pallas(x_flat, params, out_dtype)

    # vmap glue: (B*S, D_out) -> (B, S, D_out)
    return out_flat.reshape(B, S, N)


if __name__ == "__main__":
    key = jax.random.PRNGKey(0)
    kx, kw, kb = jax.random.split(key, 3)

    # Small shapes consistent with the Vmap forward: x is (B, S, D_in).
    B, S, D_in, D_out = 2, 4, 32, 32

    x = jax.random.normal(kx, (B, S, D_in), dtype=jnp.float32)
    # Deterministic "nn.Linear(D_in, D_out)" parameters (PyTorch layout).
    weight = jax.random.normal(kw, (D_out, D_in), dtype=jnp.float32) * (1.0 / jnp.sqrt(D_in))
    bias = jax.random.normal(kb, (D_out,), dtype=jnp.float32) * 0.1

    # One-time parameter prep (transpose + pad hoisted out of the hot path).
    params = prepare_vmap_linear_params(weight, bias)

    # force_pallas=True so the test exercises the kernel even at tiny shapes
    # (the production dispatch would route these to plain XLA).
    out = vmap_linear(x, params, force_pallas=True)
    out = jax.block_until_ready(out)

    # Reference: pure-JAX equivalent of Vmap(nn.Linear)
    ref = (x.reshape(B * S, D_in) @ weight.T + bias).reshape(B, S, D_out)
    assert out.shape == (B, S, D_out)
    assert jnp.allclose(out, ref, atol=1e-5, rtol=1e-5)

    print("KERNEL_OK")
</pallas_src>

<mosaic_0001>
module attributes {stable_mosaic.version = 11 : i64} {
  func.func @_vmap_linear_kernel_f32out(%arg0: i32, %arg1: i32, %arg2: i32, %arg3: memref<8x128xf32, #tpu.memory_space<vmem>>, %arg4: memref<128x128xf32, #tpu.memory_space<vmem>>, %arg5: memref<1x128xf32, #tpu.memory_space<vmem>>, %arg6: memref<8x128xf32, #tpu.memory_space<vmem>>) attributes {dimension_semantics = [#tpu.dimension_semantics<parallel>, #tpu.dimension_semantics<parallel>, #tpu.dimension_semantics<arbitrary>], iteration_bounds = array<i64: 1, 1, 1>, scalar_prefetch = 0 : i64, scratch_operands = 0 : i64, tpu.core_type = #tpu.core_type<tc>, window_params = [{transform_indices = @transform_0, window_bounds = array<i64: 8, 128>}, {transform_indices = @transform_1, window_bounds = array<i64: 128, 128>}, {transform_indices = @transform_2, window_bounds = array<i64: 1, 128>}, {transform_indices = @transform_3, window_bounds = array<i64: 8, 128>}]} {
    %c0_i32 = arith.constant 0 : i32
    %0 = arith.cmpi eq, %arg2, %c0_i32 : i32
    %1 = arith.extui %0 : i1 to i32
    %c0_i32_0 = arith.constant 0 : i32
    %2 = arith.cmpi ne, %1, %c0_i32_0 : i32
    scf.if %2 {
      %c0_8 = arith.constant 0 : index
      %c0_9 = arith.constant 0 : index
      %9 = vector.load %arg5[%c0_8, %c0_9] : memref<1x128xf32, #tpu.memory_space<vmem>>, vector<1x128xf32>
      %10 = vector.shape_cast %9 : vector<1x128xf32> to vector<1x128xf32>
      %11 = vector.broadcast %10 : vector<1x128xf32> to vector<8x128xf32>
      %c0_10 = arith.constant 0 : index
      %c0_11 = arith.constant 0 : index
      %12 = vector.load %arg6[%c0_10, %c0_11] : memref<8x128xf32, #tpu.memory_space<vmem>>, vector<8x128xf32>
      tpu.vector_store %arg6[%c0_10, %c0_11], %11 {strides = array<i32>} : memref<8x128xf32, #tpu.memory_space<vmem>>, vector<8x128xf32>,
    } else {
    }
    %c0 = arith.constant 0 : index
    %c0_1 = arith.constant 0 : index
    %3 = vector.load %arg6[%c0, %c0_1] : memref<8x128xf32, #tpu.memory_space<vmem>>, vector<8x128xf32>
    %c0_2 = arith.constant 0 : index
    %c0_3 = arith.constant 0 : index
    %4 = vector.load %arg3[%c0_2, %c0_3] : memref<8x128xf32, #tpu.memory_space<vmem>>, vector<8x128xf32>
    %c0_4 = arith.constant 0 : index
    %c0_5 = arith.constant 0 : index
    %5 = vector.load %arg4[%c0_4, %c0_5] : memref<128x128xf32, #tpu.memory_space<vmem>>, vector<128x128xf32>
    %cst = arith.constant dense<0.000000e+00> : vector<8x128xf32>
    %6 = tpu.matmul %4, %5, %cst {dimension_numbers = #tpu.dot_dimension_numbers<[1], [0], [0], [1], [0, 0, 1, 1], [], []>} : vector<8x128xf32>, vector<128x128xf32>, vector<8x128xf32> -> vector<8x128xf32>
    %7 = arith.addf %3, %6 : vector<8x128xf32>
    %c0_6 = arith.constant 0 : index
    %c0_7 = arith.constant 0 : index
    %8 = vector.load %arg6[%c0_6, %c0_7] : memref<8x128xf32, #tpu.memory_space<vmem>>, vector<8x128xf32>
    tpu.vector_store %arg6[%c0_6, %c0_7], %7 {strides = array<i32>} : memref<8x128xf32, #tpu.memory_space<vmem>>, vector<8x128xf32>,
    return
  }
  func.func @transform_0(%arg0: i32, %arg1: i32, %arg2: i32) -> (i32, i32) {
    %c0_i32 = arith.constant 0 : i32
    return %arg0, %arg2 : i32, i32
  }
  func.func @transform_1(%arg0: i32, %arg1: i32, %arg2: i32) -> (i32, i32) {
    %c0_i32 = arith.constant 0 : i32
    return %arg2, %arg1 : i32, i32
  }
  func.func @transform_2(%arg0: i32, %arg1: i32, %arg2: i32) -> (i32, i32) {
    %c0_i32 = arith.constant 0 : i32
    %c0_i32_0 = arith.constant 0 : i32
    return %c0_i32, %arg1 : i32, i32
  }
  func.func @transform_3(%arg0: i32, %arg1: i32, %arg2: i32) -> (i32, i32) {
    %c0_i32 = arith.constant 0 : i32
    return %arg0, %arg1 : i32, i32
  }
}

</mosaic_0001>

<bundles_post_ra>
// kernel: tpu_custom_call.1
= control target key start
LH: loop header
LB: loop body
LE: loop exit
PB: predicated region body
PF: predicated region fallthrough
CT: control target
= control target key end

     0   :  { %8 = vsyncpa [#allocation3], 0  ;;  %s390_s0 = inlined_call_operand.hbm [shape: f32[8,128], index: 0, kind: input, shape index: {}]   ;;  %s391_s1 = inlined_call_operand.hbm [shape: f32[128,128], index: 1, kind: input, shape index: {}]   ;;  %s392_s2 = inlined_call_operand.vmem [shape: f32[1,128], index: 2, kind: input, shape index: {}]   ;;  %s393_s3 = inlined_call_operand.hbm [shape: f32[8,32], index: 3, kind: output, shape index: {}]  }
   0x1   :  { %9 = vsyncpa [#allocation6], 0 }
   0x2   :  { %10 = vsyncpa [#allocation4], 0  ;;  %s316_s12 = smov [#allocation2]   ;;  %s317_s14 = smov [#allocation5]  }
   0x3   :  { %s17_s13 = sshll.u32 %s316_s12, 4  ;;  %s26_s15 = sshll.u32 %s317_s14, 4  ;;  %s18_s13 = int_to_ptr.vmem [resolvable:$true] %s17_s13  ;;  %s344_s15 = int_to_ptr.vmem [resolvable:$true] %s26_s15 }
   0x4   :  { %s244_s18 = scalar_lea.hbm %s390_s0, 128 }
   0x5   :  { %p245_p0 = scmp.ne.s32.totalorder %s390_s0, %s244_s18  ;;  %p248_p1 = scmp.lt.u32.totalorder %s244_s18, %s390_s0 }
   0x7   :  { %p250_p2 = pnand %p248_p1, %p245_p0 }
   0x9   :  { %253 = shalt.err (!%p250_p2)
}
   0xa   :  { %s254_s23 = scalar_lea.vmem %s18_s13, 128  ;;  %p259_p4 = scmp.lt.s32.totalorder %s18_s13, %s18_s13 }
   0xb   :  { %p255_p3 = scmp.ne.s32.totalorder %s18_s13, %s254_s23  ;;  %p260_p5 = scmp.lt.s32.totalorder %s254_s23, %s254_s23 }
   0xd   :  { %p261_p6 = por %p260_p5, %p259_p4 }
   0xf   :  { %p262_p7 = pnand %p261_p6, %p255_p3 }
  0x11   :  { %265 = shalt.err (!%p262_p7)
}
  0x12   :  { %20 = dma.hbm_to_vmem [thread:$0]  %s390_s0, 128, %s18_s13, [#allocation3]  }
  0x13   :  { %s266_s28 = scalar_lea.hbm %s391_s1, 2048 }
  0x14   :  { %p267_p8 = scmp.ne.s32.totalorder %s391_s1, %s266_s28  ;;  %p270_p9 = scmp.lt.u32.totalorder %s266_s28, %s391_s1 }
  0x16   :  { %p272_p10 = pnand %p270_p9, %p267_p8 }
  0x18   :  { %275 = shalt.err (!%p272_p10)
}
  0x19   :  { %s276_s6 = scalar_lea.vmem %s344_s15, 2048  ;;  %p281_p12 = scmp.lt.s32.totalorder %s344_s15, %s344_s15 }
  0x1a   :  { %p277_p11 = scmp.ne.s32.totalorder %s344_s15, %s276_s6  ;;  %p282_p13 = scmp.lt.s32.totalorder %s276_s6, %s276_s6 }
  0x1c   :  { %p283_p0 = por %p282_p13, %p281_p12 }
  0x1e   :  { %p284_p1 = pnand %p283_p0, %p277_p11 }
  0x20   :  { %287 = shalt.err (!%p284_p1)
}
  0x21   :  { %s318_s0 = smov 128   ;;  %s319_s7 = smov 8  }
  0x22   :  { %32 = dma.hbm_to_vmem [thread:$0]  %s391_s1, 2048, %s344_s15, [#allocation6], %s318_s0, %s318_s0, %s319_s7  }
  0x23   :  { %310 = dma.done.wait [#allocation3], 128  }
  0x24   :  { %311 = vsyncadd [#allocation3], 4294967168 }
  0x25   :  { %312 = dma.done.wait [#allocation6], 2048  }
  0x26   :  { %313 = vsyncadd [#allocation6], 4294965248  ;;  %v320_v0 = vmov 0.0|0.0   ;;  %vm321_vm0 = vmmov 0   ;;  %v322_v1 = vmov 0.0   ;;  %v55_v2 = vld [vmem:[#allocation5] sm:$0xff] }
  0x27   :  { %212 = vmatprep.subr.bf16.mxu0 %v320_v0  ;;  %209 = vmatprep.mubr.msk.f32.mxu0 %vm321_vm0, %v322_v1  ;;  %v56_v3 = vld [vmem:[#allocation5 + $0x8] sm:$0xff]  ;;  %v57_v4 = vld [vmem:[#allocation5 + $0x10] sm:$0xff]  ;;  %v58_v6 = vld [vmem:[#allocation5 + $0x18] sm:$0xff]  ;;  %s323_s11 = smov [#allocation7]  }
  0x28   :  { %v213_v5 = vpack.c.bf16 %v56_v3, %v55_v2  ;;  %v216_v7 = vpack.c.bf16 %v58_v6, %v57_v4  ;;  %v59_v8 = vld [vmem:[#allocation5 + $0x20] sm:$0xff]  ;;  %v60_v9 = vld [vmem:[#allocation5 + $0x28] sm:$0xff]  ;;  %v61_v11 = vld [vmem:[#allocation5 + $0x30] sm:$0xff]  ;;  %s149_s12 = sshll.u32 %s323_s11, 4  ;;  %s150_s12 = int_to_ptr.vmem [resolvable:$true] %s149_s12 }
  0x29   :  { %v219_v10 = vpack.c.bf16 %v60_v9, %v59_v8  ;;  %v62_v12 = vld [vmem:[#allocation5 + $0x38] sm:$0xff]  ;;  %v63_v14 = vld [vmem:[#allocation5 + $0x40] sm:$0xff]  ;;  %v64_v15 = vld [vmem:[#allocation5 + $0x48] sm:$0xff]  ;;  %s288_s13 = scalar_lea.vmem %s150_s12, 128  ;;  %p293_p3 = scmp.lt.s32.totalorder %s150_s12, %s150_s12 }
  0x2a   :  { %214 = vmatpush3.bf16.msra.mxu0 %v213_v5  ;;  %v222_v13 = vpack.c.bf16 %v62_v12, %v61_v11  ;;  %v225_v16 = vpack.c.bf16 %v64_v15, %v63_v14  ;;  %v65_v17 = vld [vmem:[#allocation5 + $0x50] sm:$0xff]  ;;  %v66_v18 = vld [vmem:[#allocation5 + $0x58] sm:$0xff]  ;;  %v67_v20 = vld [vmem:[#allocation5 + $0x60] sm:$0xff]  ;;  %p289_p2 = scmp.ne.s32.totalorder %s150_s12, %s288_s13  ;;  %p294_p4 = scmp.lt.s32.totalorder %s288_s13, %s288_s13 }
  0x2b   :  { %215 = vmatprep.subr.bf16.mxu0 %v320_v0  ;;  %v228_v19 = vpack.c.bf16 %v66_v18, %v65_v17  ;;  %v68_v21 = vld [vmem:[#allocation5 + $0x68] sm:$0xff]  ;;  %v69_v23 = vld [vmem:[#allocation5 + $0x70] sm:$0xff]  ;;  %v70_v24 = vld [vmem:[#allocation5 + $0x78] sm:$0xff] }
  0x2c   :  { %v231_v22 = vpack.c.bf16 %v68_v21, %v67_v20  ;;  %v234_v25 = vpack.c.bf16 %v70_v24, %v69_v23  ;;  %v54_v26 = vld [vmem:[#allocation2] sm:$0xff]  ;;  %p295_p5 = por %p294_p4, %p293_p3 }
  0x2d   :  { %v159_v27 = vld [vmem:[%s392_s2] ss:$0 sm:$0xff] }
  0x2e   :  { %217 = vmatpush3.bf16.msra.mxu0 %v216_v7  ;;  %p296_p6 = pnand %p295_p5, %p289_p2 }
  0x2f   :  { %218 = vmatprep.subr.bf16.mxu0 %v320_v0 }
  0x32   :  { %220 = vmatpush3.bf16.msra.mxu0 %v219_v10 }
  0x33   :  { %221 = vmatprep.subr.bf16.mxu0 %v320_v0 }
  0x36   :  { %223 = vmatpush3.bf16.msra.mxu0 %v222_v13 }
  0x37   :  { %224 = vmatprep.subr.bf16.mxu0 %v320_v0 }
  0x3a   :  { %226 = vmatpush3.bf16.msra.mxu0 %v225_v16 }
  0x3b   :  { %227 = vmatprep.subr.bf16.mxu0 %v320_v0 }
  0x3e   :  { %229 = vmatpush3.bf16.msra.mxu0 %v228_v19 }
  0x3f   :  { %230 = vmatprep.subr.bf16.mxu0 %v320_v0 }
  0x42   :  { %232 = vmatpush3.bf16.msra.mxu0 %v231_v22 }
  0x43   :  { %233 = vmatprep.subr.bf16.mxu0 %v320_v0 }
  0x46   :  { %235 = vmatpush3.bf16.msra.mxu0 %v234_v25 }
  0x49   :  { %210 = vmatmul.mubr.f32.vlgmr.msra.gmra.mrb[0].mxu0 %v54_v26 }
 0x11c   :  { %v137_v28 = vpop.f32.mrb[0].mxu0 }
 0x11d   :  { %v141_v29 = vadd.f32 %v159_v27, %v137_v28  ;;  %v211_v30 = vpop.f32.mrb[1].mxu0 }
 0x11f   :  { %142 = vst [vmem:[#allocation7] sm:$0xff] %v141_v29 }
 0x120   :  { %299 = shalt.err (!%p296_p6)
}
 0x121   :  { %s300_s16 = scalar_lea.hbm %s393_s3, 128 }
 0x122   :  { %p301_p7 = scmp.ne.s32.totalorder %s393_s3, %s300_s16  ;;  %p304_p8 = scmp.lt.u32.totalorder %s300_s16, %s393_s3 }
 0x124   :  { %p306_p9 = pnand %p304_p8, %p301_p7 }
 0x126   :  { %309 = shalt.err (!%p306_p9)
}
 0x127   :  { %152 = dma.vmem_to_hbm [thread:$0]  %s150_s12, 128, %s393_s3, [#allocation4]  }
 0x128   :  { %314 = dma.done.wait [#allocation4], 128  }
 0x129   :  { %315 = vsyncadd [#allocation4], 4294967168 }
 0x12a   :  { %156 = vsyncpa [#allocation3], 1 }
 0x12b   :  { %157 = vsyncpa [#allocation6], 1 }
 0x12c   :  { %158 = vsyncpa [#allocation4], 1 }

</bundles_post_ra>
